<compile_context>
chip_gen: v5e
topology: v5e:2x2
jax: 0.10.0
libtpu: 0.0.40
codegen_flags: <defaults>
</compile_context>

<pallas_src>
import functools
import math

import jax
import jax.numpy as jnp
from jax import lax
from jax.experimental import pallas as pl
from jax.experimental.pallas import tpu as pltpu


def _round_up(x, m):
    return (x + m - 1) // m * m


def _vmem_capacity_bytes():
    """Physical VMEM per core (generation-aware), conservative fallback."""
    try:
        cap = getattr(pltpu.get_tpu_info(), "vmem_capacity_bytes", None)
        if cap:
            return int(cap)
    except Exception:
        pass
    return 64 * 1024 * 1024  # assume the smallest (v7x-sized) VMEM


def _clamp_vmem_limit(need_bytes, cap_bytes):
    lo = 16 * 1024 * 1024
    hi = max(lo, int(cap_bytes) - 16 * 1024 * 1024)  # leave runtime headroom
    return int(min(max(int(need_bytes), lo), hi))


# ---------------------------------------------------------------------------
# Small-vocab fast path: VMEM-resident table, dense one-hot gather on the MXU.
# ---------------------------------------------------------------------------
def _embed_onehot_kernel(tok_ref, table_ref, out_ref, *, scale):
    T = out_ref.shape[0]
    V = table_ref.shape[0]
    tok = tok_ref[...]                                   # (T, 1) int32, sublane-aligned
    iota_v = lax.broadcasted_iota(jnp.int32, (T, V), 1)  # (T, V)
    one_hot = (iota_v == tok).astype(table_ref.dtype)    # lane-broadcast compare
    rows = jnp.dot(one_hot, table_ref[...],
                   preferred_element_type=jnp.float32)   # (T, E) gather on the MXU
    out_ref[...] = (rows * scale).astype(out_ref.dtype)  # one dense scale+store


# ---------------------------------------------------------------------------
# Large-vocab path: HBM per-row DMA gather, double-buffered across grid steps.
# ---------------------------------------------------------------------------
def _embed_gather_kernel(tok_ref, table_hbm, out_ref, rows, sems, *,
                         scale, tokens_per_step):
    T = tokens_per_step
    step = pl.program_id(0)
    nsteps = pl.num_programs(0)
    slot = lax.rem(step, 2)

    def issue(s, dst_slot):
        base = s * T

        @pl.loop(0, T)
        def _(i):
            tok = tok_ref[base + i]                      # scalar id from SMEM
            pltpu.make_async_copy(
                table_hbm.at[pl.ds(tok, 1)],             # (1, E) HBM row
                rows.at[dst_slot, pl.ds(i, 1)],          # (1, E) VMEM slot row
                sems.at[dst_slot],
            ).start()

    # Prime the pipeline with this step's gathers on the very first step.
    @pl.when(step == 0)
    def _():
        issue(0, 0)

    # Issue NEXT step's gathers into the other slot before any wait
    # (SMEM reads of the next ids happen before the wait loop).
    @pl.when(step + 1 < nsteps)
    def _():
        issue(step + 1, 1 - slot)

    # Drain this step's slot: wait on the exact descriptors that were issued.
    base = step * T

    @pl.loop(0, T)
    def _(i):
        tok = tok_ref[base + i]
        pltpu.make_async_copy(
            table_hbm.at[pl.ds(tok, 1)],
            rows.at[slot, pl.ds(i, 1)],
            sems.at[slot],
        ).wait()

    # One dense (T, E) scale + store (f32 math, cast on the store).
    out_ref[...] = (rows[slot].astype(jnp.float32) * scale).astype(out_ref.dtype)


# ---------------------------------------------------------------------------
# Wrapper == TokenEmbedding.forward: embedding(tokens) * sqrt(emb_size)
# ---------------------------------------------------------------------------
def token_embedding(tokens, emb_table, *,
                    tokens_per_step=512,
                    max_block_bytes=8 * 1024 * 1024,
                    max_onehot_vocab=2048,
                    force_gather=False):
    B, S = tokens.shape
    V, E = emb_table.shape
    dtype = emb_table.dtype
    itemsize = jnp.dtype(dtype).itemsize
    scale = float(math.sqrt(E))

    # Clamp ids so an out-of-range token can never become an OOB DMA / gather.
    flat = jnp.clip(tokens.reshape(-1).astype(jnp.int32), 0, V - 1)
    n_tok = flat.shape[0]

    # Tokens per grid step: multiple of 8, output block capped at max_block_bytes.
    t_cap = max(8, (max_block_bytes // max(1, E * itemsize)) // 8 * 8)
    T = min(tokens_per_step, t_cap, _round_up(n_tok, 8))
    T = max(8, (T // 8) * 8)

    grid_n = pl.cdiv(n_tok, T)
    n_pad = grid_n * T
    if n_pad != n_tok:
        # Padded slots gather row 0 and are masked away on the final partial
        # output block -- no wrapper-side slice of the (n_tok, E) result.
        flat = jnp.pad(flat, (0, n_pad - n_tok))

    vmem_cap = _vmem_capacity_bytes()
    table_bytes = V * E * itemsize
    out_block_bytes = T * E * itemsize
    out_shape = jax.ShapeDtypeStruct((n_tok, E), dtype)

    onehot_need = (2 * table_bytes                      # resident table + dot operand
                   + T * V * itemsize                   # one-hot tile
                   + 2 * out_block_bytes + T * E * 4    # out buffers + f32 rows
                   + 2 * T * 128 * 4                    # (T, 1) id blocks (lane-padded)
                   + (4 << 20))
    use_onehot = (not force_gather) and (V <= max_onehot_vocab) and (
        onehot_need <= max(16 << 20, vmem_cap - (16 << 20)))

    if use_onehot:
        out = pl.pallas_call(
            functools.partial(_embed_onehot_kernel, scale=scale),
            out_shape=out_shape,
            grid=(grid_n,),
            in_specs=[
                # Token ids as a sublane-aligned (T, 1) block.
                pl.BlockSpec((T, 1), lambda i: (i, 0)),
                # Whole table resident in VMEM; constant index_map + single
                # buffering -> fetched once, half the footprint of Buffered(2).
                pl.BlockSpec((V, E), lambda i: (0, 0),
                             pipeline_mode=pl.Buffered(1)),
            ],
            out_specs=pl.BlockSpec((T, E), lambda i: (i, 0)),
            compiler_params=pltpu.CompilerParams(
                dimension_semantics=("parallel",),
                vmem_limit_bytes=_clamp_vmem_limit(onehot_need, vmem_cap),
            ),
        )(flat.reshape(n_pad, 1), emb_table)
    else:
        gather_need = (2 * out_block_bytes              # 2-slot landing tile
                       + 2 * out_block_bytes            # pipelined output blocks
                       + T * E * 4                      # f32 scale temp
                       + (4 << 20))
        # TODO(synk): chunk the scalar-prefetched id array (SMEM 1-D pads to
        # next_pow2(4N) bytes) for extremely long sequences (> ~256K tokens).
        out = pl.pallas_call(
            functools.partial(_embed_gather_kernel, scale=scale,
                              tokens_per_step=T),
            out_shape=out_shape,
            grid_spec=pltpu.PrefetchScalarGridSpec(
                num_scalar_prefetch=1,                  # token ids -> SMEM
                grid=(grid_n,),
                in_specs=[pl.BlockSpec(memory_space=pl.ANY)],  # table stays in HBM
                out_specs=pl.BlockSpec((T, E), lambda i, tok: (i, 0)),
                scratch_shapes=[
                    pltpu.VMEM((2, T, E), dtype),       # double-buffered landing tile
                    pltpu.SemaphoreType.DMA((2,)),      # per-slot completion sems
                ],
            ),
            compiler_params=pltpu.CompilerParams(
                # Cross-step slot handoff => steps must run sequentially.
                dimension_semantics=("arbitrary",),
                vmem_limit_bytes=_clamp_vmem_limit(gather_need, vmem_cap),
            ),
        )(flat, emb_table)

    return out.reshape(B, S, E)


if __name__ == "__main__":
    VOCAB_SIZE = 64
    EMB_SIZE = 32
    BATCH = 2
    SEQ = 8

    key = jax.random.PRNGKey(0)
    k_emb, k_tok = jax.random.split(key)

    # Deterministic synthetic parameters (nn.Embedding weight ~ N(0, 1)).
    emb_table = jax.random.normal(k_emb, (VOCAB_SIZE, EMB_SIZE), dtype=jnp.float32)
    tokens = jax.random.randint(k_tok, (BATCH, SEQ), 0, VOCAB_SIZE, dtype=jnp.int32)

    ref = emb_table[tokens] * math.sqrt(EMB_SIZE)

    # Small-vocab fast path (VMEM-resident table, one-hot MXU gather).
    out_fast = jax.block_until_ready(token_embedding(tokens, emb_table))
    assert out_fast.shape == (BATCH, SEQ, EMB_SIZE)
    # Tolerance allows for MXU matmul rounding of the f32 one-hot selection.
    assert jnp.allclose(out_fast, ref, atol=1e-5, rtol=5e-3), (
        float(jnp.max(jnp.abs(out_fast - ref))))

    # Large-vocab path (HBM per-row DMA gather, double-buffered across steps),
    # forced at small shapes to validate it; lookup is exact here.
    out_gather = jax.block_until_ready(
        token_embedding(tokens, emb_table, force_gather=True))
    assert jnp.allclose(out_gather, ref, atol=1e-6, rtol=1e-6), (
        float(jnp.max(jnp.abs(out_gather - ref))))

    print("KERNEL_OK")
</pallas_src>

<mosaic_0001>
module attributes {stable_mosaic.version = 11 : i64} {
  func.func @_embed_onehot_kernel(%arg0: i32, %arg1: memref<16x1xi32, #tpu.memory_space<vmem>>, %arg2: memref<64x32xf32, #tpu.memory_space<vmem>>, %arg3: memref<16x32xf32, #tpu.memory_space<vmem>>) attributes {dimension_semantics = [#tpu.dimension_semantics<parallel>], iteration_bounds = array<i64: 1>, scalar_prefetch = 0 : i64, scratch_operands = 0 : i64, tpu.core_type = #tpu.core_type<tc>, window_params = [{transform_indices = @transform_0, window_bounds = array<i64: 16, 1>}, {pipeline_mode = #tpu.pipeline_mode<synchronous>, transform_indices = @transform_1, window_bounds = array<i64: 64, 32>}, {transform_indices = @transform_2, window_bounds = array<i64: 16, 32>}]} {
    %c0 = arith.constant 0 : index
    %c0_0 = arith.constant 0 : index
    %0 = vector.load %arg1[%c0, %c0_0] : memref<16x1xi32, #tpu.memory_space<vmem>>, vector<16x1xi32>
    %1 = tpu.iota {dimensions = array<i32: 1>} : vector<16x64xi32>
    %2 = vector.broadcast %0 : vector<16x1xi32> to vector<16x64xi32>
    %3 = arith.cmpi eq, %1, %2 : vector<16x64xi32>
    %4 = arith.extui %3 : vector<16x64xi1> to vector<16x64xi32>
    %5 = arith.sitofp %4 : vector<16x64xi32> to vector<16x64xf32>
    %c0_1 = arith.constant 0 : index
    %c0_2 = arith.constant 0 : index
    %6 = vector.load %arg2[%c0_1, %c0_2] : memref<64x32xf32, #tpu.memory_space<vmem>>, vector<64x32xf32>
    %cst = arith.constant dense<0.000000e+00> : vector<16x32xf32>
    %7 = tpu.matmul %5, %6, %cst {dimension_numbers = #tpu.dot_dimension_numbers<[1], [0], [0], [1], [0, 0, 1, 1], [], []>} : vector<16x64xf32>, vector<64x32xf32>, vector<16x32xf32> -> vector<16x32xf32>
    %cst_3 = arith.constant 5.65685415 : f32
    %8 = vector.broadcast %cst_3 : f32 to vector<16x32xf32>
    %9 = arith.mulf %7, %8 : vector<16x32xf32>
    %c0_4 = arith.constant 0 : index
    %c0_5 = arith.constant 0 : index
    %10 = vector.load %arg3[%c0_4, %c0_5] : memref<16x32xf32, #tpu.memory_space<vmem>>, vector<16x32xf32>
    tpu.vector_store %arg3[%c0_4, %c0_5], %9 {strides = array<i32>} : memref<16x32xf32, #tpu.memory_space<vmem>>, vector<16x32xf32>,
    return
  }
  func.func @transform_0(%arg0: i32) -> (i32, i32) {
    %c0_i32 = arith.constant 0 : i32
    %c0_i32_0 = arith.constant 0 : i32
    return %arg0, %c0_i32 : i32, i32
  }
  func.func @transform_1(%arg0: i32) -> (i32, i32) {
    %c0_i32 = arith.constant 0 : i32
    %c0_i32_0 = arith.constant 0 : i32
    %c0_i32_1 = arith.constant 0 : i32
    return %c0_i32, %c0_i32_0 : i32, i32
  }
  func.func @transform_2(%arg0: i32) -> (i32, i32) {
    %c0_i32 = arith.constant 0 : i32
    %c0_i32_0 = arith.constant 0 : i32
    return %arg0, %c0_i32 : i32, i32
  }
}

</mosaic_0001>

<bundles_post_ra>
// kernel: tpu_custom_call.1
= control target key start
LH: loop header
LB: loop body
LE: loop exit
PB: predicated region body
PF: predicated region fallthrough
CT: control target
= control target key end

     0   :  { %v133_v2 = vmov 0   ;;  %s186_s0 = inlined_call_operand.vmem [shape: s32[16,1], index: 0, kind: input, shape index: {}]   ;;  %s187_s1 = inlined_call_operand.vmem [shape: f32[64,32], index: 1, kind: input, shape index: {}]   ;;  %s188_s2 = inlined_call_operand.hbm [shape: f32[16,32], index: 2, kind: output, shape index: {}]  }
   0x1   :  { %v12_v0 = vld [vmem:[%s186_s0] sm:$0xff]  ;;  %v35_v1 = vld [vmem:[%s187_s1 + $0x38] sm:$0xff]  ;;  %106 = vset.pattern.permute.xlu0 %v133_v2  ;;  %v34_v3 = vld [vmem:[%s187_s1 + $0x30] sm:$0xff] }
   0x2   :  { %51 = vmatpush.msra.mxu0 %v35_v1  ;;  %17 = vperm.xlu0 %106, %v12_v0   ;;  %v33_v4 = vld [vmem:[%s187_s1 + $0x28] sm:$0xff] }
   0x3   :  { %93 = vmatpush.msra.mxu1 %v35_v1 }
   0x4   :  { %52 = vmatpush.msra.mxu0 %v34_v3 }
   0x5   :  { %7 = vsyncpa [#allocation3], 0  ;;  %v32_v5 = vld [vmem:[%s187_s1 + $0x20] sm:$0xff]  ;;  %94 = vmatpush.msra.mxu1 %v34_v3  ;;  %v31_v6 = vld [vmem:[%s187_s1 + $0x18] sm:$0xff]  ;;  %v14_v11 = vlaneseq  ;;  %vm36_vm0 = vcmask 523264   ;;  %v134_v14 = vmov 0.0  }
   0x6   :  { %53 = vmatpush.msra.mxu0 %v33_v4  ;;  %v13_v7 = vld [vmem:[%s186_s0 + $0x8] sm:$0xff]  ;;  %v30_v8 = vld [vmem:[%s187_s1 + $0x10] sm:$0xff]  ;;  %v28_v10 = vld [vmem:[%s187_s1] sm:$0xff]  ;;  %vm68_vm3 = vcmask 261120   ;;  %s135_s0 = smov [#allocation2]   ;;  %s77_s3 = sshll.u32 %s188_s2, 4  ;;  %s78_s3 = int_to_ptr.hbm [resolvable:$true] %s77_s3 }
   0x7   :  { %95 = vmatpush.msra.mxu1 %v33_v4  ;;  %v29_v9 = vld [vmem:[%s187_s1 + $0x8] sm:$0xff]  ;;  %v15_v12 = vand.u32 127, %v14_v11  ;;  %s75_s1 = sshll.u32 %s135_s0, 4  ;;  %s136_s4 = smov 128   ;;  %s76_s1 = int_to_ptr.vmem [resolvable:$true] %s75_s1 }
   0x8   :  { %54 = vmatpush.msra.mxu0 %v32_v5  ;;  %s137_s5 = smov 8  }
   0x9   :  { %96 = vmatpush.msra.mxu1 %v32_v5 }
   0xa   :  { %55 = vmatpush.msra.mxu0 %v31_v6  ;;  %20 = vperm.xlu0 %106, %v13_v7  }
   0xb   :  { %97 = vmatpush.msra.mxu1 %v31_v6 }
   0xc   :  { %56 = vmatpush.msra.mxu0 %v30_v8 }
   0xd   :  { %98 = vmatpush.msra.mxu1 %v30_v8 }
   0xe   :  { %57 = vmatpush.msra.mxu0 %v29_v9 }
   0xf   :  { %99 = vmatpush.msra.mxu1 %v29_v9 }
  0x10   :  { %58 = vmatpush.msra.mxu0 %v28_v10 }
  0x11   :  { %100 = vmatpush.msra.mxu1 %v28_v10 }
  0x74   :  { %v18_v13 = vpop.permute.xlu0 %17 }
  0x75   :  { %vm22_vm1 = vcmp.eq.s32.totalorder %v15_v12, %v18_v13 }
  0x76   :  { %v89_v15 = vsel %vm22_vm1, 1.0, %v134_v14 }
  0x77   :  { %91 = vmatmul.msk.f32.vlgmr.msra.gmra.mxu0 %vm36_vm0, %v89_v15 }
  0x7c   :  { %v21_v16 = vpop.permute.xlu0 %20 }
  0x7d   :  { %vm23_vm2 = vcmp.eq.s32.totalorder %v15_v12, %v21_v16 }
  0x7e   :  { %v90_v17 = vsel %vm23_vm2, 1.0, %v134_v14 }
  0x7f   :  { %92 = vmatmul.msk.f32.vlgmr.msra.gmra.mxu1 %vm36_vm0, %v90_v17 }
  0xf4   :  { %v60_v18 = vpop.f32.mrf.mxu0 }
  0xf5   :  { %v66_v19 = vmul.f32 5.656854, %v60_v18 }
  0xf7   :  { %69 = vst.msk [vmem:[#allocation2] sm:$0xff] %vm68_vm3, %v66_v19 }
  0xfc   :  { %v63_v20 = vpop.f32.mrf.mxu1 }
  0xfd   :  { %v67_v21 = vmul.f32 5.656854, %v63_v20 }
  0xff   :  { %70 = vst.msk [vmem:[#allocation2 + $0x8] sm:$0xff] %vm68_vm3, %v67_v21 }
 0x100   :  { %83 = dma.vmem_to_hbm [thread:$0]  %s76_s1, 256, %s78_s3, [#allocation3], %s136_s4, %s136_s4, %s137_s5  }
 0x101   :  { %131 = dma.done.wait [#allocation3], 256  }
 0x102   :  { %132 = vsyncadd [#allocation3], 4294967040 }
 0x103   :  { %88 = vsyncpa [#allocation3], 1 }

</bundles_post_ra>
